<compile_context>
chip_gen: v7x
topology: tpu7x:2x2x1
jax: 0.10.0
libtpu: 0.0.40
codegen_flags: <defaults>
</compile_context>

<pallas_src>
import functools

import jax
import jax.numpy as jnp
from jax import lax
from jax.experimental import pallas as pl
from jax.experimental.pallas import tpu as pltpu

LANE = 128
SUBLANE = 8
NUM_CORES = 2  # leading "parallel" grid axis (v7x has 2 TCs; no-op elsewhere)


def _pow_gamma(x, gamma):
    """x**gamma; uses repeated VPU multiplies for small integer gamma."""
    g = float(gamma)
    if g == round(g) and 0 <= int(round(g)) <= 4:
        gi = int(round(g))
        if gi == 0:
            return jnp.ones_like(x)
        r = x
        for _ in range(gi - 1):
            r = r * x
        return r
    return jnp.power(x, g)  # non-integer gamma: fall back to pow (EUP)


def _sep_focal_partial_kernel(pred_ref, tgt_ref, w_ref, out_ref, *,
                              gamma, n_valid, tm, blocks_per_core, needs_mask):
    c = pl.program_id(0)   # core split ("parallel")
    i = pl.program_id(1)   # row-block walk ("arbitrary" reduction axis)

    @pl.when(i == 0)
    def _():
        out_ref[...] = jnp.zeros_like(out_ref)

    x = pred_ref[...].astype(jnp.float32)
    tgt = tgt_ref[...].astype(jnp.float32)
    w = w_ref[...].astype(jnp.float32)

    pos_mask = tgt == 1.0
    neg_mask = tgt < 1.0

    if needs_mask:
        # Logical (unclamped) element indices of this tile.  Anything >= n_valid
        # is 128-alignment padding, a row beyond the array edge, or a clamped
        # (duplicate) tile on the second core -> contributes exactly zero.
        row0 = (c * blocks_per_core + i) * tm
        row_iota = lax.broadcasted_iota(jnp.int32, (tm, LANE), 0)
        lane_iota = lax.broadcasted_iota(jnp.int32, (tm, LANE), 1)
        elem_idx = (row0 + row_iota) * LANE + lane_iota
        valid = elem_idx < n_valid
        pos_mask = valid & pos_mask
        neg_mask = valid & neg_mask

    # Shared-EUP sigmoid / stable log terms:
    #   e = exp(-|x|), L = log1p(e)
    #   sigmoid(x)        =  inv          (x>=0)   or  e*inv   (x<0)
    #   1 - sigmoid(x)    =  e*inv        (x>=0)   or  inv     (x<0)
    #   -log(sigmoid(x))  =  relu(-x) + L
    #   -log(1-sigmoid(x))=  relu( x) + L
    abs_x = jnp.abs(x)
    e = jnp.exp(-abs_x)
    inv = 1.0 / (1.0 + e)
    big_l = jnp.log1p(e)
    x_nonneg = x >= 0.0
    p = jnp.where(x_nonneg, inv, e * inv)
    one_m_p = jnp.where(x_nonneg, e * inv, inv)
    neg_log_p = jnp.maximum(-x, 0.0) + big_l      # -log(sigmoid(x))
    neg_log_1mp = jnp.maximum(x, 0.0) + big_l     # -log(1 - sigmoid(x))

    # alpha / (1 - alpha) are applied once on the scalar sums in the wrapper.
    pos_loss = neg_log_p * _pow_gamma(one_m_p, gamma) * w
    neg_loss = neg_log_1mp * _pow_gamma(p, gamma)

    zero = jnp.zeros_like(x)
    ones = jnp.ones_like(x)
    pos_loss = jnp.where(pos_mask, pos_loss, zero)
    neg_loss = jnp.where(neg_mask, neg_loss, zero)
    pos_w = jnp.where(pos_mask, w, zero)
    pos_cnt = jnp.where(pos_mask, ones, zero)

    def vreg_sum(v):
        # (tm, 128) -> (8, 128) with pure VPU vreg adds (no cross-lane XLU).
        return v.reshape(tm // SUBLANE, SUBLANE, LANE).sum(axis=0)

    out_ref[0, 0, :, :] += vreg_sum(pos_loss)
    out_ref[0, 1, :, :] += vreg_sum(neg_loss)
    out_ref[0, 2, :, :] += vreg_sum(pos_w)
    out_ref[0, 3, :, :] += vreg_sum(pos_cnt)


def sep_focal_loss(pred, target, weight, avg_factor,
                   gamma=2.0, alpha=0.25, loss_weight=1.0, tm=2048):
    """Forward of SEPFocalLoss (reduction='sum') -> scalar f32 loss."""
    n = pred.size
    pred_f = pred.reshape(-1)       # keep native dtype; cast in-kernel
    tgt_f = target.reshape(-1)
    w_f = weight.reshape(-1)

    # Only pad to the next multiple of 128 (lane width) when strictly needed so
    # the flat arrays can be viewed as (rows, 128); padded elements are killed
    # by the in-kernel element mask, so the pad value is irrelevant.
    if n % LANE != 0:
        pad = LANE - n % LANE
        pred_f = jnp.pad(pred_f, (0, pad))
        tgt_f = jnp.pad(tgt_f, (0, pad))
        w_f = jnp.pad(w_f, (0, pad))
    rows = pred_f.shape[0] // LANE

    pred2d = pred_f.reshape(rows, LANE)
    tgt2d = tgt_f.reshape(rows, LANE)
    w2d = w_f.reshape(rows, LANE)

    # Big streaming tile, capped at the (sublane-rounded) row count so tiny
    # inputs don't allocate oversized VMEM buffers.
    tm_eff = max(SUBLANE,
                 min(int(tm), ((rows + SUBLANE - 1) // SUBLANE) * SUBLANE))
    n_blocks = -(-rows // tm_eff)
    num_cores = NUM_CORES if n_blocks >= NUM_CORES else 1
    blocks_per_core = -(-n_blocks // num_cores)

    # The element mask compiles out when tiles cover the data exactly and the
    # blocks split evenly across cores (no duplicated / overhanging tiles).
    needs_mask = not (n % (tm_eff * LANE) == 0 and n_blocks % num_cores == 0)

    def in_map(c, i):
        # Clamp so the DMA source stays in bounds; the kernel's logical
        # (unclamped) element mask zeroes any duplicated/overhanging tile.
        return (jnp.minimum(c * blocks_per_core + i, n_blocks - 1), 0)

    kernel = functools.partial(
        _sep_focal_partial_kernel,
        gamma=float(gamma), n_valid=int(n), tm=int(tm_eff),
        blocks_per_core=int(blocks_per_core), needs_mask=bool(needs_mask))

    tile_spec = pl.BlockSpec((tm_eff, LANE), in_map)
    partials = pl.pallas_call(
        kernel,
        out_shape=jax.ShapeDtypeStruct((num_cores, 4, SUBLANE, LANE),
                                       jnp.float32),
        grid=(num_cores, blocks_per_core),
        in_specs=[tile_spec, tile_spec, tile_spec],
        out_specs=pl.BlockSpec((1, 4, SUBLANE, LANE),
                               lambda c, i: (c, 0, 0, 0)),
        compiler_params=pltpu.CompilerParams(
            dimension_semantics=("parallel", "arbitrary")),
    )(pred2d, tgt2d, w2d)

    # Tiny final cross-lane reduce + scalar combine in plain JAX.
    sums = partials.sum(axis=(0, 2, 3))          # (4,)
    pos_loss_sum = sums[0] * jnp.float32(alpha)
    neg_loss_sum = sums[1] * jnp.float32(1.0 - alpha)
    pos_w_sum = sums[2]
    pos_cnt = sums[3]

    # no positives: loss = neg_loss.sum() / avg_factor
    # else:         loss = pos_loss.sum()/pos_w.sum() + neg_loss.sum()/avg_factor
    safe_pos_w = jnp.where(pos_cnt > 0, pos_w_sum, 1.0)
    pos_term = jnp.where(pos_cnt > 0, pos_loss_sum / safe_pos_w, 0.0)
    loss = pos_term + neg_loss_sum / jnp.float32(avg_factor)

    # SEPFocalLoss: loss_cls = loss_weight * loss; reduction='sum' on a scalar
    # is the identity.  (Other reductions call exit() in the reference module.)
    # TODO(synk): backward pass / other reductions are not implemented (forward only).
    return jnp.float32(loss_weight) * loss


def _reference_loss(pred, target, weight, avg_factor,
                    gamma=2.0, alpha=0.25, loss_weight=1.0):
    p = jax.nn.sigmoid(pred.astype(jnp.float32))
    t = target.astype(jnp.float32)
    w = weight.astype(jnp.float32)
    pos = t == 1.0
    neg = t < 1.0
    pos_loss = jnp.sum(jnp.where(pos, -jnp.log(p) * (1.0 - p) ** gamma * w * alpha, 0.0))
    neg_loss = jnp.sum(jnp.where(neg, -jnp.log(1.0 - p) * p ** gamma * (1.0 - alpha), 0.0))
    pos_w = jnp.sum(jnp.where(pos, w, 0.0))
    npos = jnp.sum(pos)
    pos_term = jnp.where(npos > 0, pos_loss / jnp.where(npos > 0, pos_w, 1.0), 0.0)
    return loss_weight * (pos_term + neg_loss / avg_factor)


def _check(shape, key):
    k1, k2, k3 = jax.random.split(key, 3)
    pred = jax.random.normal(k1, shape, dtype=jnp.float32)
    # mostly background (0), a few positives (1)
    target = (jax.random.uniform(k2, shape) > 0.95).astype(jnp.float32)
    weight = jax.random.uniform(k3, shape, minval=0.5, maxval=1.5,
                                dtype=jnp.float32)
    avg_factor = float(max(int(jnp.sum(target)), 1))

    loss = sep_focal_loss(pred, target, weight, avg_factor,
                          gamma=2.0, alpha=0.25, loss_weight=1.0)
    loss = jax.block_until_ready(loss)
    ref = jax.block_until_ready(
        _reference_loss(pred, target, weight, avg_factor,
                        gamma=2.0, alpha=0.25, loss_weight=1.0))

    assert jnp.isfinite(loss), f"loss is not finite for shape {shape}"
    assert abs(float(loss) - float(ref)) < 1e-3 * max(1.0, abs(float(ref))), (
        f"mismatch at {shape}: kernel={float(loss)} ref={float(ref)}")


if __name__ == "__main__":
    key = jax.random.PRNGKey(0)
    ka, kb = jax.random.split(key, 2)

    # typical focal-loss inputs: (num_anchors, num_classes) logits / one-hot-ish targets
    _check((128, 8), ka)   # lane-aligned element count
    _check((37, 21), kb)   # ragged element count (exercises the tail mask)

    print("KERNEL_OK")
</pallas_src>

<mosaic_0001>
module attributes {stable_mosaic.version = 11 : i64} {
  func.func @_sep_focal_partial_kernel(%arg0: i32, %arg1: i32, %arg2: memref<8x128xf32, #tpu.memory_space<vmem>>, %arg3: memref<8x128xf32, #tpu.memory_space<vmem>>, %arg4: memref<8x128xf32, #tpu.memory_space<vmem>>, %arg5: memref<1x4x8x128xf32, #tpu.memory_space<vmem>>) attributes {dimension_semantics = [#tpu.dimension_semantics<parallel>, #tpu.dimension_semantics<arbitrary>], iteration_bounds = array<i64: 1, 1>, scalar_prefetch = 0 : i64, scratch_operands = 0 : i64, tpu.core_type = #tpu.core_type<tc>, window_params = [{transform_indices = @transform_0, window_bounds = array<i64: 8, 128>}, {transform_indices = @transform_1, window_bounds = array<i64: 8, 128>}, {transform_indices = @transform_2, window_bounds = array<i64: 8, 128>}, {transform_indices = @transform_3, window_bounds = array<i64: 1, 4, 8, 128>}]} {
    %c0_i32 = arith.constant 0 : i32
    %0 = arith.cmpi eq, %arg1, %c0_i32 : i32
    %1 = arith.extui %0 : i1 to i32
    %c0_i32_0 = arith.constant 0 : i32
    %2 = arith.cmpi ne, %1, %c0_i32_0 : i32
    scf.if %2 {
      %cst_49 = arith.constant 0.000000e+00 : f32
      %76 = vector.broadcast %cst_49 : f32 to vector<1x4x8x128xf32>
      %c0_50 = arith.constant 0 : index
      %c0_51 = arith.constant 0 : index
      %c0_52 = arith.constant 0 : index
      %c0_53 = arith.constant 0 : index
      %77 = vector.load %arg5[%c0_50, %c0_51, %c0_52, %c0_53] : memref<1x4x8x128xf32, #tpu.memory_space<vmem>>, vector<1x4x8x128xf32>
      tpu.vector_store %arg5[%c0_50, %c0_51, %c0_52, %c0_53], %76 {strides = array<i32>} : memref<1x4x8x128xf32, #tpu.memory_space<vmem>>, vector<1x4x8x128xf32>,
    } else {
    }
    %c0 = arith.constant 0 : index
    %c0_1 = arith.constant 0 : index
    %3 = vector.load %arg2[%c0, %c0_1] : memref<8x128xf32, #tpu.memory_space<vmem>>, vector<8x128xf32>
    %c0_2 = arith.constant 0 : index
    %c0_3 = arith.constant 0 : index
    %4 = vector.load %arg3[%c0_2, %c0_3] : memref<8x128xf32, #tpu.memory_space<vmem>>, vector<8x128xf32>
    %c0_4 = arith.constant 0 : index
    %c0_5 = arith.constant 0 : index
    %5 = vector.load %arg4[%c0_4, %c0_5] : memref<8x128xf32, #tpu.memory_space<vmem>>, vector<8x128xf32>
    %cst = arith.constant 1.000000e+00 : f32
    %6 = vector.broadcast %cst : f32 to vector<8x128xf32>
    %7 = arith.cmpf oeq, %4, %6 : vector<8x128xf32>
    %cst_6 = arith.constant 1.000000e+00 : f32
    %8 = vector.broadcast %cst_6 : f32 to vector<8x128xf32>
    %9 = arith.cmpf olt, %4, %8 : vector<8x128xf32>
    %10 = math.absf %3 : vector<8x128xf32>
    %cst_7 = arith.constant 0.000000e+00 : f32
    %11 = vector.broadcast %cst_7 : f32 to vector<8x128xf32>
    %12 = arith.subf %11, %10 : vector<8x128xf32>
    %13 = math.exp %12 : vector<8x128xf32>
    %cst_8 = arith.constant 1.000000e+00 : f32
    %14 = vector.broadcast %cst_8 : f32 to vector<8x128xf32>
    %15 = arith.addf %14, %13 : vector<8x128xf32>
    %cst_9 = arith.constant 1.000000e+00 : f32
    %16 = vector.broadcast %cst_9 : f32 to vector<8x128xf32>
    %17 = arith.divf %16, %15 : vector<8x128xf32>
    %18 = math.log1p %13 : vector<8x128xf32>
    %cst_10 = arith.constant 0.000000e+00 : f32
    %19 = vector.broadcast %cst_10 : f32 to vector<8x128xf32>
    %20 = arith.cmpf oge, %3, %19 : vector<8x128xf32>
    %21 = arith.mulf %13, %17 : vector<8x128xf32>
    %22 = arith.select %20, %17, %21 : vector<8x128xi1>, vector<8x128xf32>
    %23 = arith.mulf %13, %17 : vector<8x128xf32>
    %24 = arith.select %20, %23, %17 : vector<8x128xi1>, vector<8x128xf32>
    %cst_11 = arith.constant 0.000000e+00 : f32
    %25 = vector.broadcast %cst_11 : f32 to vector<8x128xf32>
    %26 = arith.subf %25, %3 : vector<8x128xf32>
    %cst_12 = arith.constant 0.000000e+00 : f32
    %27 = vector.broadcast %cst_12 : f32 to vector<8x128xf32>
    %28 = arith.maximumf %26, %27 : vector<8x128xf32>
    %29 = arith.addf %28, %18 : vector<8x128xf32>
    %cst_13 = arith.constant 0.000000e+00 : f32
    %30 = vector.broadcast %cst_13 : f32 to vector<8x128xf32>
    %31 = arith.maximumf %3, %30 : vector<8x128xf32>
    %32 = arith.addf %31, %18 : vector<8x128xf32>
    %33 = arith.mulf %24, %24 : vector<8x128xf32>
    %34 = arith.mulf %29, %33 : vector<8x128xf32>
    %35 = arith.mulf %34, %5 : vector<8x128xf32>
    %36 = arith.mulf %22, %22 : vector<8x128xf32>
    %37 = arith.mulf %32, %36 : vector<8x128xf32>
    %cst_14 = arith.constant 0.000000e+00 : f32
    %38 = vector.broadcast %cst_14 : f32 to vector<8x128xf32>
    %cst_15 = arith.constant 1.000000e+00 : f32
    %39 = vector.broadcast %cst_15 : f32 to vector<8x128xf32>
    %40 = arith.select %7, %35, %38 : vector<8x128xi1>, vector<8x128xf32>
    %41 = arith.select %9, %37, %38 : vector<8x128xi1>, vector<8x128xf32>
    %42 = arith.select %7, %5, %38 : vector<8x128xi1>, vector<8x128xf32>
    %43 = arith.select %7, %39, %38 : vector<8x128xi1>, vector<8x128xf32>
    %c0_16 = arith.constant 0 : index
    %c0_17 = arith.constant 0 : index
    %c0_18 = arith.constant 0 : index
    %c0_19 = arith.constant 0 : index
    %44 = vector.load %arg5[%c0_16, %c0_17, %c0_18, %c0_19] : memref<1x4x8x128xf32, #tpu.memory_space<vmem>>, vector<1x1x8x128xf32>
    %45 = vector.shape_cast %44 : vector<1x1x8x128xf32> to vector<8x128xf32>
    %46 = vector.shape_cast %40 : vector<8x128xf32> to vector<1x8x128xf32>
    %cst_20 = arith.constant dense<0.000000e+00> : vector<8x128xf32>
    %47 = vector.multi_reduction <add>, %46, %cst_20 [0] : vector<1x8x128xf32> to vector<8x128xf32>
    %48 = arith.addf %45, %47 : vector<8x128xf32>
    %c0_21 = arith.constant 0 : index
    %c0_22 = arith.constant 0 : index
    %c0_23 = arith.constant 0 : index
    %c0_24 = arith.constant 0 : index
    %49 = vector.load %arg5[%c0_21, %c0_22, %c0_23, %c0_24] : memref<1x4x8x128xf32, #tpu.memory_space<vmem>>, vector<1x1x8x128xf32>
    %50 = vector.shape_cast %49 : vector<1x1x8x128xf32> to vector<8x128xf32>
    %51 = vector.shape_cast %48 : vector<8x128xf32> to vector<1x1x8x128xf32>
    tpu.vector_store %arg5[%c0_21, %c0_22, %c0_23, %c0_24], %51 {strides = array<i32>} : memref<1x4x8x128xf32, #tpu.memory_space<vmem>>, vector<1x1x8x128xf32>,
    %c0_25 = arith.constant 0 : index
    %c1 = arith.constant 1 : index
    %c0_26 = arith.constant 0 : index
    %c0_27 = arith.constant 0 : index
    %52 = vector.load %arg5[%c0_25, %c1, %c0_26, %c0_27] : memref<1x4x8x128xf32, #tpu.memory_space<vmem>>, vector<1x1x8x128xf32>
    %53 = vector.shape_cast %52 : vector<1x1x8x128xf32> to vector<8x128xf32>
    %54 = vector.shape_cast %41 : vector<8x128xf32> to vector<1x8x128xf32>
    %cst_28 = arith.constant dense<0.000000e+00> : vector<8x128xf32>
    %55 = vector.multi_reduction <add>, %54, %cst_28 [0] : vector<1x8x128xf32> to vector<8x128xf32>
    %56 = arith.addf %53, %55 : vector<8x128xf32>
    %c0_29 = arith.constant 0 : index
    %c1_30 = arith.constant 1 : index
    %c0_31 = arith.constant 0 : index
    %c0_32 = arith.constant 0 : index
    %57 = vector.load %arg5[%c0_29, %c1_30, %c0_31, %c0_32] : memref<1x4x8x128xf32, #tpu.memory_space<vmem>>, vector<1x1x8x128xf32>
    %58 = vector.shape_cast %57 : vector<1x1x8x128xf32> to vector<8x128xf32>
    %59 = vector.shape_cast %56 : vector<8x128xf32> to vector<1x1x8x128xf32>
    tpu.vector_store %arg5[%c0_29, %c1_30, %c0_31, %c0_32], %59 {strides = array<i32>} : memref<1x4x8x128xf32, #tpu.memory_space<vmem>>, vector<1x1x8x128xf32>,
    %c0_33 = arith.constant 0 : index
    %c2 = arith.constant 2 : index
    %c0_34 = arith.constant 0 : index
    %c0_35 = arith.constant 0 : index
    %60 = vector.load %arg5[%c0_33, %c2, %c0_34, %c0_35] : memref<1x4x8x128xf32, #tpu.memory_space<vmem>>, vector<1x1x8x128xf32>
    %61 = vector.shape_cast %60 : vector<1x1x8x128xf32> to vector<8x128xf32>
    %62 = vector.shape_cast %42 : vector<8x128xf32> to vector<1x8x128xf32>
    %cst_36 = arith.constant dense<0.000000e+00> : vector<8x128xf32>
    %63 = vector.multi_reduction <add>, %62, %cst_36 [0] : vector<1x8x128xf32> to vector<8x128xf32>
    %64 = arith.addf %61, %63 : vector<8x128xf32>
    %c0_37 = arith.constant 0 : index
    %c2_38 = arith.constant 2 : index
    %c0_39 = arith.constant 0 : index
    %c0_40 = arith.constant 0 : index
    %65 = vector.load %arg5[%c0_37, %c2_38, %c0_39, %c0_40] : memref<1x4x8x128xf32, #tpu.memory_space<vmem>>, vector<1x1x8x128xf32>
    %66 = vector.shape_cast %65 : vector<1x1x8x128xf32> to vector<8x128xf32>
    %67 = vector.shape_cast %64 : vector<8x128xf32> to vector<1x1x8x128xf32>
    tpu.vector_store %arg5[%c0_37, %c2_38, %c0_39, %c0_40], %67 {strides = array<i32>} : memref<1x4x8x128xf32, #tpu.memory_space<vmem>>, vector<1x1x8x128xf32>,
    %c0_41 = arith.constant 0 : index
    %c3 = arith.constant 3 : index
    %c0_42 = arith.constant 0 : index
    %c0_43 = arith.constant 0 : index
    %68 = vector.load %arg5[%c0_41, %c3, %c0_42, %c0_43] : memref<1x4x8x128xf32, #tpu.memory_space<vmem>>, vector<1x1x8x128xf32>
    %69 = vector.shape_cast %68 : vector<1x1x8x128xf32> to vector<8x128xf32>
    %70 = vector.shape_cast %43 : vector<8x128xf32> to vector<1x8x128xf32>
    %cst_44 = arith.constant dense<0.000000e+00> : vector<8x128xf32>
    %71 = vector.multi_reduction <add>, %70, %cst_44 [0] : vector<1x8x128xf32> to vector<8x128xf32>
    %72 = arith.addf %69, %71 : vector<8x128xf32>
    %c0_45 = arith.constant 0 : index
    %c3_46 = arith.constant 3 : index
    %c0_47 = arith.constant 0 : index
    %c0_48 = arith.constant 0 : index
    %73 = vector.load %arg5[%c0_45, %c3_46, %c0_47, %c0_48] : memref<1x4x8x128xf32, #tpu.memory_space<vmem>>, vector<1x1x8x128xf32>
    %74 = vector.shape_cast %73 : vector<1x1x8x128xf32> to vector<8x128xf32>
    %75 = vector.shape_cast %72 : vector<8x128xf32> to vector<1x1x8x128xf32>
    tpu.vector_store %arg5[%c0_45, %c3_46, %c0_47, %c0_48], %75 {strides = array<i32>} : memref<1x4x8x128xf32, #tpu.memory_space<vmem>>, vector<1x1x8x128xf32>,
    return
  }
  func.func @transform_0(%arg0: i32, %arg1: i32) -> (i32, i32) {
    %c1_i32 = arith.constant 1 : i32
    %0 = arith.muli %arg0, %c1_i32 : i32
    %1 = arith.addi %0, %arg1 : i32
    %c0_i32 = arith.constant 0 : i32
    %2 = arith.minsi %1, %c0_i32 : i32
    %c0_i32_0 = arith.constant 0 : i32
    %c0_i32_1 = arith.constant 0 : i32
    return %2, %c0_i32_0 : i32, i32
  }
  func.func @transform_1(%arg0: i32, %arg1: i32) -> (i32, i32) {
    %c1_i32 = arith.constant 1 : i32
    %0 = arith.muli %arg0, %c1_i32 : i32
    %1 = arith.addi %0, %arg1 : i32
    %c0_i32 = arith.constant 0 : i32
    %2 = arith.minsi %1, %c0_i32 : i32
    %c0_i32_0 = arith.constant 0 : i32
    %c0_i32_1 = arith.constant 0 : i32
    return %2, %c0_i32_0 : i32, i32
  }
  func.func @transform_2(%arg0: i32, %arg1: i32) -> (i32, i32) {
    %c1_i32 = arith.constant 1 : i32
    %0 = arith.muli %arg0, %c1_i32 : i32
    %1 = arith.addi %0, %arg1 : i32
    %c0_i32 = arith.constant 0 : i32
    %2 = arith.minsi %1, %c0_i32 : i32
    %c0_i32_0 = arith.constant 0 : i32
    %c0_i32_1 = arith.constant 0 : i32
    return %2, %c0_i32_0 : i32, i32
  }
  func.func @transform_3(%arg0: i32, %arg1: i32) -> (i32, i32, i32, i32) {
    %c0_i32 = arith.constant 0 : i32
    %c0_i32_0 = arith.constant 0 : i32
    %c0_i32_1 = arith.constant 0 : i32
    %c0_i32_2 = arith.constant 0 : i32
    return %arg0, %c0_i32, %c0_i32_0, %c0_i32_1 : i32, i32, i32, i32
  }
}

</mosaic_0001>

<bundles_post_ra>
// kernel: tpu_custom_call.1
= control target key start
LH: loop header
LB: loop body
LE: loop exit
PB: predicated region body
PF: predicated region fallthrough
CT: control target
= control target key end

     0   :  { %8 = vsyncpa [#allocation3], 0  ;;  %s349_s0 = inlined_call_operand.hbm [shape: f32[8,128], index: 0, kind: input, shape index: {}]   ;;  %s350_s1 = inlined_call_operand.hbm [shape: f32[8,128], index: 1, kind: input, shape index: {}]   ;;  %s351_s2 = inlined_call_operand.hbm [shape: f32[8,128], index: 2, kind: input, shape index: {}]   ;;  %s352_s3 = inlined_call_operand.hbm [shape: f32[1,4,8,128], index: 3, kind: output, shape index: {}]  }
   0x1   :  { %9 = vsyncpa [#allocation6], 0 }
   0x2   :  { %10 = vsyncpa [#allocation4], 0  ;;  %s271_s12 = smov [#allocation5]   ;;  %s272_s14 = smov [#allocation2]  }
   0x3   :  { %s37_s13 = sshll.u32 %s271_s12, 4  ;;  %s22_s15 = sshll.u32 %s272_s14, 4  ;;  %s38_s13 = int_to_ptr.vmem [resolvable:$true] %s37_s13  ;;  %s23_s15 = int_to_ptr.vmem [resolvable:$true] %s22_s15 }
   0x4   :  { %s177_s18 = scalar_lea.hbm %s350_s1, 128 }
   0x5   :  { %p178_p0 = scmp.ne.s32.totalorder %s350_s1, %s177_s18  ;;  %p181_p1 = scmp.lt.u32.totalorder %s177_s18, %s350_s1 }
   0x7   :  { %p183_p2 = pnand %p181_p1, %p178_p0 }
   0x9   :  { %186 = shalt.err (!%p183_p2)
}
   0xa   :  { %s187_s23 = scalar_lea.vmem %s38_s13, 128  ;;  %p192_p4 = scmp.lt.s32.totalorder %s38_s13, %s38_s13 }
   0xb   :  { %p188_p3 = scmp.ne.s32.totalorder %s38_s13, %s187_s23  ;;  %p193_p5 = scmp.lt.s32.totalorder %s187_s23, %s187_s23 }
   0xd   :  { %p194_p6 = por %p193_p5, %p192_p4 }
   0xf   :  { %p195_p7 = pnand %p194_p6, %p188_p3 }
  0x11   :  { %198 = shalt.err (!%p195_p7)
}
  0x12   :  { %40 = dma.hbm_to_vmem [thread:$0]  %s350_s1, 128, %s38_s13, [#allocation6]  }
  0x13   :  { %s199_s28 = scalar_lea.hbm %s349_s0, 128 }
  0x14   :  { %p200_p8 = scmp.ne.s32.totalorder %s349_s0, %s199_s28  ;;  %p203_p9 = scmp.lt.u32.totalorder %s199_s28, %s349_s0 }
  0x16   :  { %p205_p10 = pnand %p203_p9, %p200_p8 }
  0x18   :  { %208 = shalt.err (!%p205_p10)
}
  0x19   :  { %s209_s6 = scalar_lea.vmem %s23_s15, 128  ;;  %p214_p12 = scmp.lt.s32.totalorder %s23_s15, %s23_s15 }
  0x1a   :  { %p210_p11 = scmp.ne.s32.totalorder %s23_s15, %s209_s6  ;;  %p215_p13 = scmp.lt.s32.totalorder %s209_s6, %s209_s6 }
  0x1c   :  { %p216_p0 = por %p215_p13, %p214_p12 }
  0x1e   :  { %p217_p1 = pnand %p216_p0, %p210_p11 }
  0x20   :  { %220 = shalt.err (!%p217_p1)
}
  0x21   :  { %25 = dma.hbm_to_vmem [thread:$0]  %s349_s0, 128, %s23_s15, [#allocation3]  }
  0x22   :  { %s273_s8 = smov [#allocation7]   ;;  %s221_s12 = scalar_lea.hbm %s351_s2, 128 }
  0x23   :  { %s52_s9 = sshll.u32 %s273_s8, 4  ;;  %p222_p2 = scmp.ne.s32.totalorder %s351_s2, %s221_s12  ;;  %s53_s9 = int_to_ptr.vmem [resolvable:$true] %s52_s9 }
  0x24   :  { %p225_p3 = scmp.lt.u32.totalorder %s221_s12, %s351_s2 }
  0x26   :  { %p227_p4 = pnand %p225_p3, %p222_p2 }
  0x28   :  { %230 = shalt.err (!%p227_p4)
}
  0x29   :  { %s231_s18 = scalar_lea.vmem %s53_s9, 128  ;;  %p236_p6 = scmp.lt.s32.totalorder %s53_s9, %s53_s9 }
  0x2a   :  { %p232_p5 = scmp.ne.s32.totalorder %s53_s9, %s231_s18  ;;  %p237_p7 = scmp.lt.s32.totalorder %s231_s18, %s231_s18 }
  0x2c   :  { %p238_p8 = por %p237_p7, %p236_p6 }
  0x2e   :  { %p239_p9 = pnand %p238_p8, %p232_p5 }
  0x30   :  { %242 = shalt.err (!%p239_p9)
}
  0x31   :  { %55 = dma.hbm_to_vmem [thread:$0]  %s351_s2, 128, %s53_s9, [#allocation6]  }
  0x32   :  { %265 = dma.done.wait [#allocation3], 128  }
  0x33   :  { %266 = vsyncadd [#allocation3], 4294967168 }
  0x34   :  { %267 = dma.done.wait [#allocation6], 256  }
  0x35   :  { %268 = vsyncadd [#allocation6], 4294967040  ;;  %v82_v0 = vld [vmem:[#allocation2] sm:$0xff]  ;;  %v83_v1 = vld [vmem:[#allocation5] sm:$0xff]  ;;  %v274_v5 = vmov 0.0   ;;  %s275_s2 = smov [#allocation8]  }
  0x36   :  { %v84_v2 = vld [vmem:[#allocation7] sm:$0xff]  ;;  %vm85_vm0 = vcmp.eq.f32.partialorder %v83_v1, 1.0  ;;  %v87_v3 = vand.u32 2147483647, %v82_v0  ;;  %v107_v14 = vsub.f32 0.0, %v82_v0  ;;  %vm103_vm1 = vcmp.ge.f32.partialorder %v82_v0, 0.0 }
  0x37   :  { %v119_v4 = vsel %vm85_vm0, %v84_v2, 0.0  ;;  %v120_v6 = vsel %vm85_vm0, 1.0, %v274_v5  ;;  %v110_v20 = vmax.f32 %v82_v0, 0.0  ;;  %vm86_vm3 = vcmp.lt.f32.partialorder %v83_v1, 1.0  ;;  %s145_s19 = sshll.u32 %s275_s2, 4  ;;  %s146_s19 = int_to_ptr.vmem [resolvable:$true] %s145_s19 }
  0x38   :  { %v88_v7 = vsub.f32 0.0, %v87_v3  ;;  %134 = vst [vmem:[#allocation8 + $0x10] sm:$0xff] %v119_v4  ;;  %139 = vst [vmem:[#allocation8 + $0x18] sm:$0xff] %v120_v6  ;;  %v108_v19 = vmax.f32 %v107_v14, 0.0  ;;  %s243_s20 = scalar_lea.vmem %s146_s19, 512  ;;  %p248_p11 = scmp.lt.s32.totalorder %s146_s19, %s146_s19 }
  0x39   :  { %p244_p10 = scmp.ne.s32.totalorder %s146_s19, %s243_s20  ;;  %p249_p12 = scmp.lt.s32.totalorder %s243_s20, %s243_s20 }
  0x3a   :  { %v89_v8 = vmul.f32 1.442695, %v88_v7 }
  0x3b   :  { %p250_p13 = por %p249_p12, %p248_p11 }
  0x3c   :  { %171 = vpow2.f32 %v89_v8 }
  0x3d   :  { %p251_p0 = pnand %p250_p13, %p244_p10 }
  0x46   :  { %v172_v9 = vpop.eup %171 }
  0x47   :  { %v91_v10 = vadd.f32 1.0, %v172_v9  ;;  %v97_v11 = vmul.f32 -0.5, %v172_v9  ;;  %v100_v13 = vand.u32 2147483647, %v172_v9 }
  0x49   :  { %173 = vrcp.f32 %v91_v10  ;;  %v98_v12 = vadd.f32 1.0, %v97_v11  ;;  %vm101_vm2 = vcmp.lt.f32.partialorder %v100_v13, 0.0004427343 }
  0x4a   :  { %175 = vlog2.f32 %v91_v10 }
  0x4b   :  { %v99_v16 = vmul.f32 %v172_v9, %v98_v12 }
  0x53   :  { %v174_v15 = vpop.eup %173 }
  0x54   :  { %v176_v17 = vpop.eup %175  ;;  %v104_v18 = vmul.f32 %v174_v15, %v172_v9 }
  0x55   :  { %v96_v21 = vmul.f32 0.6931472, %v176_v17 }
  0x56   :  { %v106_v22 = vsel %vm103_vm1, %v104_v18, %v174_v15  ;;  %v105_v23 = vsel %vm103_vm1, %v174_v15, %v104_v18 }
  0x57   :  { %v102_v24 = vsel %vm101_vm2, %v99_v16, %v96_v21  ;;  %v112_v25 = vmul.f32 %v106_v22, %v106_v22  ;;  %v115_v26 = vmul.f32 %v105_v23, %v105_v23 }
  0x58   :  { %v109_v27 = vadd.f32 %v108_v19, %v102_v24  ;;  %v111_v28 = vadd.f32 %v110_v20, %v102_v24 }
  0x5a   :  { %v113_v29 = vmul.f32 %v112_v25, %v109_v27  ;;  %v116_v30 = vmul.f32 %v115_v26, %v111_v28 }
  0x5c   :  { %v114_v31 = vmul.f32 %v113_v29, %v84_v2  ;;  %v118_v32 = vsel %vm86_vm3, %v116_v30, 0.0 }
  0x5d   :  { %129 = vst [vmem:[#allocation8 + $0x8] sm:$0xff] %v118_v32 }
  0x5e   :  { %v117_v33 = vsel %vm85_vm0, %v114_v31, 0.0 }
  0x5f   :  { %124 = vst [vmem:[#allocation8] sm:$0xff] %v117_v33 }
  0x60   :  { %254 = shalt.err (!%p251_p0)
}
  0x61   :  { %s255_s23 = scalar_lea.hbm %s352_s3, 512 }
  0x62   :  { %p256_p1 = scmp.ne.s32.totalorder %s352_s3, %s255_s23  ;;  %p259_p2 = scmp.lt.u32.totalorder %s255_s23, %s352_s3 }
  0x64   :  { %p261_p3 = pnand %p259_p2, %p256_p1 }
  0x66   :  { %264 = shalt.err (!%p261_p3)
}
  0x67   :  { %s276_s28 = smov 128   ;;  %s277_s29 = smov 8  }
  0x68   :  { %151 = dma.vmem_to_hbm [thread:$0]  %s146_s19, 512, %s352_s3, [#allocation4], %s276_s28, %s276_s28, %s277_s29  }
  0x69   :  { %269 = dma.done.wait [#allocation4], 512  }
  0x6a   :  { %270 = vsyncadd [#allocation4], 4294966784 }
  0x6b   :  { %155 = vsyncpa [#allocation3], 1 }
  0x6c   :  { %156 = vsyncpa [#allocation6], 1 }
  0x6d   :  { %157 = vsyncpa [#allocation4], 1 }

</bundles_post_ra>
